<compile_context>
chip_gen: v7x
topology: tpu7x:2x2x1
jax: 0.10.0
libtpu: 0.0.40
codegen_flags: <defaults>
</compile_context>

<pallas_src>
import jax
import jax.numpy as jnp
from jax.experimental import pallas as pl
from jax.experimental.pallas import tpu as pltpu


def _round_up(x, m):
    return ((x + m - 1) // m) * m


def _mlp_kernel(x_ref, w1_ref, b1_ref, w2_ref, b2_ref, o_ref):
    # Fused 2-layer MLP on one batch tile, fully VMEM resident:
    #   o = relu(x @ W1 + b1) @ W2 + b2
    # Activations are cast to the weight dtype in-kernel (bf16 fast path),
    # matmuls accumulate in f32 on the MXU, bias + ReLU stay f32.
    x = x_ref[...].astype(w1_ref.dtype)
    h = jnp.dot(x, w1_ref[...], preferred_element_type=jnp.float32)
    h = jnp.maximum(h + b1_ref[...], 0.0)
    y = jnp.dot(h.astype(w2_ref.dtype), w2_ref[...],
                preferred_element_type=jnp.float32) + b2_ref[...]
    o_ref[...] = y.astype(o_ref.dtype)


def prepare_params(w1, b1, w2, b2, *, mxu_dtype=None):
    """One-time parameter prep (do NOT call per forward pass).

    Pads only the hidden dim to a full 128-lane tile (the hidden intermediate
    never touches HBM, so its lane-density is free) and optionally casts the
    tiny weights to a narrower MXU dtype.  Feature / output dims stay unpadded
    because they do hit HBM every call.
    """
    n_feature, n_hidden = w1.shape
    n_output = w2.shape[1]
    H = _round_up(n_hidden, 128)

    w_dtype = mxu_dtype if mxu_dtype is not None else w1.dtype
    w1p = jnp.zeros((n_feature, H), w_dtype).at[:, :n_hidden].set(
        w1.astype(w_dtype))
    b1p = jnp.zeros((1, H), jnp.float32).at[:, :n_hidden].set(
        b1.reshape(1, n_hidden).astype(jnp.float32))
    w2p = jnp.zeros((H, n_output), w_dtype).at[:n_hidden, :].set(
        w2.astype(w_dtype))
    b2p = b2.reshape(1, n_output).astype(jnp.float32)
    return w1p, b1p, w2p, b2p


def net_forward(x, w1p, b1p, w2p, b2p, *, batch_tile=2048):
    """Forward pass of Net.

    x   : (B, n_feature) activations (unpadded).
    w1p : (n_feature, H)   H = n_hidden rounded up to 128 (prepare_params).
    b1p : (1, H)
    w2p : (H, n_output)
    b2p : (1, n_output)
    """
    out_dtype = x.dtype
    B, n_feature = x.shape
    H = w1p.shape[1]
    n_output = w2p.shape[1]

    # Batch tiling: multiple of 8.  For B >= 16 cap the tile at ceil(B/2) so
    # the grid always has >= 2 steps and the "parallel" axis can be split
    # across both v7x TensorCores (no effect on v5e/v6e).
    Bp0 = _round_up(B, 8)
    if Bp0 >= 16:
        half = _round_up(-(-Bp0 // 2), 8)
        tb = max(8, min(batch_tile, half))
    else:
        tb = Bp0
    Bp = _round_up(B, tb)
    if Bp != B:
        x = jnp.pad(x, ((0, Bp - B), (0, 0)))
    grid = (Bp // tb,)

    in_bytes = jnp.dtype(x.dtype).itemsize
    out_bytes = jnp.dtype(out_dtype).itemsize
    w_bytes = jnp.dtype(w1p.dtype).itemsize
    lane = 128

    # Honest VMEM budget: double-buffered activation in/out tiles (lane-padded
    # physical layout) + resident weights/biases + compiler headroom.
    vmem_bytes = int(min(
        2 * tb * _round_up(n_feature, lane) * in_bytes     # x double-buffer
        + 2 * tb * _round_up(n_output, lane) * out_bytes   # out double-buffer
        + (_round_up(n_feature, 8) * H + H * _round_up(n_output, lane)) * w_bytes
        + (H + _round_up(n_output, lane)) * 4
        + (4 << 20),
        32 << 20,
    ))

    cost = pl.CostEstimate(
        flops=2 * B * (n_feature * H + H * n_output),
        transcendentals=0,
        bytes_accessed=x.size * in_bytes
        + (w1p.size + w2p.size) * w_bytes
        + (b1p.size + b2p.size) * 4
        + Bp * n_output * out_bytes,
    )

    out = pl.pallas_call(
        _mlp_kernel,
        out_shape=jax.ShapeDtypeStruct((Bp, n_output), out_dtype),
        grid=grid,
        in_specs=[
            pl.BlockSpec((tb, n_feature), lambda i: (i, 0)),   # batch-tiled x
            pl.BlockSpec((n_feature, H), lambda i: (0, 0)),    # VMEM-resident
            pl.BlockSpec((1, H), lambda i: (0, 0)),
            pl.BlockSpec((H, n_output), lambda i: (0, 0)),
            pl.BlockSpec((1, n_output), lambda i: (0, 0)),
        ],
        out_specs=pl.BlockSpec((tb, n_output), lambda i: (i, 0)),
        compiler_params=pltpu.CompilerParams(
            dimension_semantics=("parallel",),   # v7x: split batch over 2 TCs
            vmem_limit_bytes=vmem_bytes,
        ),
        cost_estimate=cost,
    )(x, w1p, b1p, w2p, b2p)

    return out[:B] if Bp != B else out


def init_params(key, n_feature, n_hidden, n_output, dtype=jnp.float32):
    """Deterministic init mimicking torch.nn.Linear defaults
    (uniform(-1/sqrt(fan_in), 1/sqrt(fan_in))); weights stored as (in, out)."""
    k1, k2, k3, k4 = jax.random.split(key, 4)
    bound1 = 1.0 / jnp.sqrt(n_feature)
    bound2 = 1.0 / jnp.sqrt(n_hidden)
    w1 = jax.random.uniform(k1, (n_feature, n_hidden), dtype, -bound1, bound1)
    b1 = jax.random.uniform(k2, (1, n_hidden), dtype, -bound1, bound1)
    w2 = jax.random.uniform(k3, (n_hidden, n_output), dtype, -bound2, bound2)
    b2 = jax.random.uniform(k4, (1, n_output), dtype, -bound2, bound2)
    return w1, b1, w2, b2


def reference_forward(x, w1, b1, w2, b2):
    h = jnp.maximum(x @ w1 + b1, 0.0)
    return h @ w2 + b2


if __name__ == "__main__":
    n_feature, n_hidden, n_output = 8, 32, 4
    batch = 8

    key = jax.random.PRNGKey(0)
    kx, kp = jax.random.split(key)
    x = jax.random.normal(kx, (batch, n_feature), jnp.float32)
    w1, b1, w2, b2 = init_params(kp, n_feature, n_hidden, n_output)
    ref = reference_forward(x, w1, b1, w2, b2)

    # f32 MXU path: exact against the pure-jnp reference.
    params_f32 = prepare_params(w1, b1, w2, b2)
    out = jax.block_until_ready(net_forward(x, *params_f32))
    assert out.shape == (batch, n_output)
    assert jnp.allclose(out, ref, atol=1e-5, rtol=1e-5)

    # bf16 MXU fast path (weights bf16, activations cast in-kernel):
    # looser tolerance because matmul operands are bf16.
    params_bf16 = prepare_params(w1, b1, w2, b2, mxu_dtype=jnp.bfloat16)
    out_bf16 = jax.block_until_ready(net_forward(x, *params_bf16))
    assert jnp.allclose(out_bf16, ref, atol=1e-1, rtol=1e-1)

    # Larger batch: exercises the multi-step batch grid (>=2 parallel steps).
    xb = jax.random.normal(kx, (2048, n_feature), jnp.float32)
    out_big = jax.block_until_ready(net_forward(xb, *params_f32))
    ref_big = reference_forward(xb, w1, b1, w2, b2)
    assert out_big.shape == (2048, n_output)
    assert jnp.allclose(out_big, ref_big, atol=1e-5, rtol=1e-5)

    # Ragged batch (not a multiple of the tile): exercises pad + slice path.
    xr = jax.random.normal(kx, (1000, n_feature), jnp.float32)
    out_r = jax.block_until_ready(net_forward(xr, *params_f32))
    ref_r = reference_forward(xr, w1, b1, w2, b2)
    assert out_r.shape == (1000, n_output)
    assert jnp.allclose(out_r, ref_r, atol=1e-5, rtol=1e-5)

    print("KERNEL_OK")
</pallas_src>

<mosaic_0001>
module attributes {stable_mosaic.version = 11 : i64} {
  func.func @_mlp_kernel(%arg0: i32, %arg1: memref<8x8xf32, #tpu.memory_space<vmem>>, %arg2: memref<8x128xf32, #tpu.memory_space<vmem>>, %arg3: memref<1x128xf32, #tpu.memory_space<vmem>>, %arg4: memref<128x4xf32, #tpu.memory_space<vmem>>, %arg5: memref<1x4xf32, #tpu.memory_space<vmem>>, %arg6: memref<8x4xf32, #tpu.memory_space<vmem>>) attributes {dimension_semantics = [#tpu.dimension_semantics<parallel>], iteration_bounds = array<i64: 1>, scalar_prefetch = 0 : i64, scratch_operands = 0 : i64, tpu.core_type = #tpu.core_type<tc>, window_params = [{transform_indices = @transform_0, window_bounds = array<i64: 8, 8>}, {pipeline_mode = #tpu.pipeline_mode<synchronous>, transform_indices = @transform_1, window_bounds = array<i64: 8, 128>}, {pipeline_mode = #tpu.pipeline_mode<synchronous>, transform_indices = @transform_2, window_bounds = array<i64: 1, 128>}, {pipeline_mode = #tpu.pipeline_mode<synchronous>, transform_indices = @transform_3, window_bounds = array<i64: 128, 4>}, {pipeline_mode = #tpu.pipeline_mode<synchronous>, transform_indices = @transform_4, window_bounds = array<i64: 1, 4>}, {transform_indices = @transform_5, window_bounds = array<i64: 8, 4>}]} {
    %c0 = arith.constant 0 : index
    %c0_0 = arith.constant 0 : index
    %0 = vector.load %arg1[%c0, %c0_0] : memref<8x8xf32, #tpu.memory_space<vmem>>, vector<8x8xf32>
    %c0_1 = arith.constant 0 : index
    %c0_2 = arith.constant 0 : index
    %1 = vector.load %arg2[%c0_1, %c0_2] : memref<8x128xf32, #tpu.memory_space<vmem>>, vector<8x128xf32>
    %cst = arith.constant dense<0.000000e+00> : vector<8x128xf32>
    %2 = tpu.matmul %0, %1, %cst {dimension_numbers = #tpu.dot_dimension_numbers<[1], [0], [0], [1], [0, 0, 1, 1], [], []>} : vector<8x8xf32>, vector<8x128xf32>, vector<8x128xf32> -> vector<8x128xf32>
    %c0_3 = arith.constant 0 : index
    %c0_4 = arith.constant 0 : index
    %3 = vector.load %arg3[%c0_3, %c0_4] : memref<1x128xf32, #tpu.memory_space<vmem>>, vector<1x128xf32>
    %4 = vector.broadcast %3 : vector<1x128xf32> to vector<8x128xf32>
    %5 = arith.addf %2, %4 : vector<8x128xf32>
    %cst_5 = arith.constant 0.000000e+00 : f32
    %6 = vector.broadcast %cst_5 : f32 to vector<8x128xf32>
    %7 = arith.maximumf %5, %6 : vector<8x128xf32>
    %c0_6 = arith.constant 0 : index
    %c0_7 = arith.constant 0 : index
    %8 = vector.load %arg4[%c0_6, %c0_7] : memref<128x4xf32, #tpu.memory_space<vmem>>, vector<128x4xf32>
    %cst_8 = arith.constant dense<0.000000e+00> : vector<8x4xf32>
    %9 = tpu.matmul %7, %8, %cst_8 {dimension_numbers = #tpu.dot_dimension_numbers<[1], [0], [0], [1], [0, 0, 1, 1], [], []>} : vector<8x128xf32>, vector<128x4xf32>, vector<8x4xf32> -> vector<8x4xf32>
    %c0_9 = arith.constant 0 : index
    %c0_10 = arith.constant 0 : index
    %10 = vector.load %arg5[%c0_9, %c0_10] : memref<1x4xf32, #tpu.memory_space<vmem>>, vector<1x4xf32>
    %11 = vector.broadcast %10 : vector<1x4xf32> to vector<8x4xf32>
    %12 = arith.addf %9, %11 : vector<8x4xf32>
    %c0_11 = arith.constant 0 : index
    %c0_12 = arith.constant 0 : index
    %13 = vector.load %arg6[%c0_11, %c0_12] : memref<8x4xf32, #tpu.memory_space<vmem>>, vector<8x4xf32>
    tpu.vector_store %arg6[%c0_11, %c0_12], %12 {strides = array<i32>} : memref<8x4xf32, #tpu.memory_space<vmem>>, vector<8x4xf32>,
    return
  }
  func.func @transform_0(%arg0: i32) -> (i32, i32) {
    %c0_i32 = arith.constant 0 : i32
    %c0_i32_0 = arith.constant 0 : i32
    return %arg0, %c0_i32 : i32, i32
  }
  func.func @transform_1(%arg0: i32) -> (i32, i32) {
    %c0_i32 = arith.constant 0 : i32
    %c0_i32_0 = arith.constant 0 : i32
    %c0_i32_1 = arith.constant 0 : i32
    return %c0_i32, %c0_i32_0 : i32, i32
  }
  func.func @transform_2(%arg0: i32) -> (i32, i32) {
    %c0_i32 = arith.constant 0 : i32
    %c0_i32_0 = arith.constant 0 : i32
    %c0_i32_1 = arith.constant 0 : i32
    return %c0_i32, %c0_i32_0 : i32, i32
  }
  func.func @transform_3(%arg0: i32) -> (i32, i32) {
    %c0_i32 = arith.constant 0 : i32
    %c0_i32_0 = arith.constant 0 : i32
    %c0_i32_1 = arith.constant 0 : i32
    return %c0_i32, %c0_i32_0 : i32, i32
  }
  func.func @transform_4(%arg0: i32) -> (i32, i32) {
    %c0_i32 = arith.constant 0 : i32
    %c0_i32_0 = arith.constant 0 : i32
    %c0_i32_1 = arith.constant 0 : i32
    return %c0_i32, %c0_i32_0 : i32, i32
  }
  func.func @transform_5(%arg0: i32) -> (i32, i32) {
    %c0_i32 = arith.constant 0 : i32
    %c0_i32_0 = arith.constant 0 : i32
    return %arg0, %c0_i32 : i32, i32
  }
}

</mosaic_0001>

<bundles_post_ra>
// kernel: tpu_custom_call.1
= control target key start
LH: loop header
LB: loop body
LE: loop exit
PB: predicated region body
PF: predicated region fallthrough
CT: control target
= control target key end

     0   :  { %vm29_vm0 = vcmask 64512   ;;  %v292_v0 = vmov 0.0   ;;  %vm293_vm1 = vmmov 0   ;;  %v294_v4 = vmov 0.0|0.0   ;;  %s388_s1 = inlined_call_operand.vmem [shape: f32[8,128], index: 1, kind: input, shape index: {}]   ;;  %s389_s0 = inlined_call_operand.vmem [shape: f32[8,8], index: 0, kind: input, shape index: {}]   ;;  %s390_s3 = inlined_call_operand.vmem [shape: f32[128,4], index: 3, kind: input, shape index: {}]   ;;  %s391_s2 = inlined_call_operand.vmem [shape: f32[1,128], index: 2, kind: input, shape index: {}]   ;;  %s392_s4 = inlined_call_operand.vmem [shape: f32[1,4], index: 4, kind: input, shape index: {}]   ;;  %s393_s5 = inlined_call_operand.vmem [shape: f32[8,4], index: 5, kind: output, shape index: {}]  }
   0x1   :  { %225 = vmatprep.subr.mxu0 %v292_v0  ;;  %v21_v1 = vld [vmem:[%s388_s1] sm:$0xff]  ;;  %227 = vmatprep.mubr.msk.f32.mxu0 %vm293_vm1, %v292_v0  ;;  %v105_v5 = vld [vmem:[%s390_s3 + $0x8] sm:$0xff]  ;;  %v106_v6 = vld [vmem:[%s390_s3 + $0x10] sm:$0xff]  ;;  %vm197_vm2 = vcmask 31744  }
   0x2   :  { %v20_v2 = vld [vmem:[%s389_s0] sm:$0xff]  ;;  %226 = vmatpush3.msra.mxu0 %v21_v1  ;;  %265 = vmatprep.subr.bf16.mxu1 %v294_v4  ;;  %v107_v7 = vld [vmem:[%s390_s3 + $0x18] sm:$0xff]  ;;  %v109_v11 = vld [vmem:[%s390_s3 + $0x28] sm:$0xff] }
   0x3   :  { %v104_v3 = vld [vmem:[%s390_s3] sm:$0xff]  ;;  %228 = vmatmul.mubr.msk.f32.vlgmr.msra.gmra.mrb[0].mxu0 %vm29_vm0, %v20_v2  ;;  %262 = vmatprep.mubr.msk.f32.mxu1 %vm293_vm1, %v292_v0  ;;  %v269_v9 = vpack.c.bf16 %v107_v7, %v106_v6  ;;  %v110_v13 = vld [vmem:[%s390_s3 + $0x30] sm:$0xff]  ;;  %v111_v14 = vld [vmem:[%s390_s3 + $0x38] sm:$0xff] }
   0x4   :  { %v266_v8 = vpack.c.bf16 %v105_v5, %v104_v3  ;;  %v108_v10 = vld [vmem:[%s390_s3 + $0x20] sm:$0xff]  ;;  %v275_v15 = vpack.c.bf16 %v111_v14, %v110_v13  ;;  %v113_v17 = vld [vmem:[%s390_s3 + $0x48] sm:$0xff]  ;;  %v114_v19 = vld [vmem:[%s390_s3 + $0x50] sm:$0xff] }
   0x5   :  { %v272_v12 = vpack.c.bf16 %v109_v11, %v108_v10  ;;  %v112_v16 = vld [vmem:[%s390_s3 + $0x40] sm:$0xff]  ;;  %v115_v20 = vld [vmem:[%s390_s3 + $0x58] sm:$0xff]  ;;  %v117_v23 = vld [vmem:[%s390_s3 + $0x68] sm:$0xff] }
   0x6   :  { %267 = vmatpush3.bf16.msra.mxu1 %v266_v8  ;;  %v278_v18 = vpack.c.bf16 %v113_v17, %v112_v16  ;;  %v281_v21 = vpack.c.bf16 %v115_v20, %v114_v19  ;;  %v116_v22 = vld [vmem:[%s390_s3 + $0x60] sm:$0xff]  ;;  %v118_v25 = vld [vmem:[%s390_s3 + $0x70] sm:$0xff]  ;;  %v119_v26 = vld [vmem:[%s390_s3 + $0x78] sm:$0xff] }
   0x7   :  { %268 = vmatprep.subr.bf16.mxu1 %v294_v4  ;;  %v284_v24 = vpack.c.bf16 %v117_v23, %v116_v22  ;;  %v287_v27 = vpack.c.bf16 %v119_v26, %v118_v25  ;;  %v203_v28 = vld [vmem:[%s391_s2] ss:$0 sm:$0xff] }
   0x8   :  { %v205_v33 = vld [vmem:[%s392_s4] ss:$0 sm:$0xff] }
   0xa   :  { %270 = vmatpush3.bf16.msra.mxu1 %v269_v9 }
   0xb   :  { %271 = vmatprep.subr.bf16.mxu1 %v294_v4 }
   0xe   :  { %273 = vmatpush3.bf16.msra.mxu1 %v272_v12 }
   0xf   :  { %274 = vmatprep.subr.bf16.mxu1 %v294_v4 }
  0x12   :  { %276 = vmatpush3.bf16.msra.mxu1 %v275_v15 }
  0x13   :  { %277 = vmatprep.subr.bf16.mxu1 %v294_v4 }
  0x16   :  { %279 = vmatpush3.bf16.msra.mxu1 %v278_v18 }
  0x17   :  { %280 = vmatprep.subr.bf16.mxu1 %v294_v4 }
  0x1a   :  { %282 = vmatpush3.bf16.msra.mxu1 %v281_v21 }
  0x1b   :  { %283 = vmatprep.subr.bf16.mxu1 %v294_v4 }
  0x1e   :  { %285 = vmatpush3.bf16.msra.mxu1 %v284_v24 }
  0x1f   :  { %286 = vmatprep.subr.bf16.mxu1 %v294_v4 }
  0x22   :  { %288 = vmatpush3.bf16.msra.mxu1 %v287_v27 }
  0xd6   :  { %v99_v29 = vpop.f32.mrb[0].mxu0 }
  0xd7   :  { %v100_v30 = vadd.f32 %v203_v28, %v99_v29  ;;  %v229_v31 = vpop.f32.mrb[1].mxu0 }
  0xd9   :  { %v103_v32 = vmax.f32 %v100_v30, 0.0 }
  0xdb   :  { %263 = vmatmul.mubr.f32.vlgmr.msra.gmra.mrb[0].mxu1 %v103_v32 }
 0x1ae   :  { %v193_v34 = vpop.f32.mrb[0].mxu1 }
 0x1af   :  { %v194_v35 = vadd.f32 %v205_v33, %v193_v34  ;;  %v264_v36 = vpop.f32.mrb[1].mxu1 }
 0x1b1   :  { %198 = vst.msk [vmem:[%s393_s5] sm:$0xff] %vm197_vm2, %v194_v35 }

</bundles_post_ra>
